<compile_context>
chip_gen: v7x
topology: tpu7x:2x2x1
jax: 0.10.0
libtpu: 0.0.40
codegen_flags: <defaults>
</compile_context>

<pallas_src>
import functools

import jax
import jax.numpy as jnp
from jax.experimental import pallas as pl
from jax.experimental.pallas import tpu as pltpu

SMOOTH_FACTOR = 0.1   # SoftBCEWithLogitsLoss smooth_factor
DICE_EPS = 1e-7       # smp DiceLoss eps (smooth=0.0 default)
W_DICE = 0.7
W_BCE = 0.3

LANE = 128
SUBLANE = 8
MAX_TILE_ROWS = 2048  # 2048x128xf32 = 1 MiB per input block (past the HBM-roofline knee)


def _cdiv(a, b):
    return (a + b - 1) // b


def _round_up(a, b):
    return _cdiv(a, b) * b


def _loss_stats_kernel(x_ref, t_ref, out_ref, acc_ref, *,
                       steps_per_slice, tile_rows, n_valid, masked):
    """Accumulates per-slice statistics into VMEM vector accumulators.

    acc_ref (VMEM f32[4, tile_rows, LANE]):
      [0] sigmoid(x) * t        (dice intersection)
      [1] sigmoid(x)            (dice cardinality, pred part)
      [2] t                     (dice cardinality, target part + empty-gt check)
      [3] elementwise BCE-with-logits vs. label-smoothed target

    out_ref (VMEM f32[1, 4, LANE]): epilogue writes each reduced statistic
    broadcast across row j; the JAX wrapper reads lane 0.
    """
    k = pl.program_id(1)

    @pl.when(k == 0)
    def _():
        acc_ref[...] = jnp.zeros_like(acc_ref)

    x = x_ref[...].astype(jnp.float32)
    t = t_ref[...].astype(jnp.float32)

    # Shared transcendentals: one exp drives both sigmoid and softplus.
    e = jnp.exp(-jnp.abs(x))                  # exp(-|x|)
    softplus = jnp.log1p(e)                   # log(1 + exp(-|x|))
    inv = 1.0 / (1.0 + e)
    p = jnp.where(x >= 0.0, inv, e * inv)     # sigmoid(x), numerically stable

    # Label smoothing: (1-t)*s + t*(1-s) = t*(1-2s) + s
    soft_t = t * (1.0 - 2.0 * SMOOTH_FACTOR) + SMOOTH_FACTOR
    # Stable BCE-with-logits: max(x,0) - x*t + log1p(exp(-|x|))
    bce = jnp.maximum(x, 0.0) - x * soft_t + softplus

    if masked:
        # Only reached when the flattened input was zero-padded; kill the
        # padded elements' contribution to every statistic.
        tile_idx = pl.program_id(0) * steps_per_slice + k
        base = tile_idx * (tile_rows * LANE)
        row = jax.lax.broadcasted_iota(jnp.int32, (tile_rows, LANE), 0)
        col = jax.lax.broadcasted_iota(jnp.int32, (tile_rows, LANE), 1)
        valid = ((base + row * LANE + col) < n_valid).astype(jnp.float32)
        p = p * valid
        t = t * valid
        bce = bce * valid

    # Vector accumulation (VPU only); cross-lane reduce happens once at the end.
    acc_ref[0] += p * t
    acc_ref[1] += p
    acc_ref[2] += t
    acc_ref[3] += bce

    @pl.when(k == steps_per_slice - 1)
    def _():
        inter = jnp.sum(acc_ref[0])
        sum_p = jnp.sum(acc_ref[1])
        sum_t = jnp.sum(acc_ref[2])
        bce_s = jnp.sum(acc_ref[3])
        ridx = jax.lax.broadcasted_iota(jnp.int32, (4, LANE), 0)
        out_ref[0] = (jnp.where(ridx == 0, inter, 0.0)
                      + jnp.where(ridx == 1, sum_p, 0.0)
                      + jnp.where(ridx == 2, sum_t, 0.0)
                      + jnp.where(ridx == 3, bce_s, 0.0))


def custom_loss(output, mask):
    """output: logits, mask: {0,1} targets; any shape (e.g. (B,1,H,W)). Scalar loss."""
    x = jnp.reshape(output, (-1,))   # native dtype kept; upcast happens in-kernel
    t = jnp.reshape(mask, (-1,))
    n = x.shape[0]

    # --- tiling ---------------------------------------------------------
    rows_needed = _cdiv(n, LANE)
    tile_rows = min(MAX_TILE_ROWS, _round_up(rows_needed, SUBLANE))
    tile_elems = tile_rows * LANE
    total_tiles = _cdiv(n, tile_elems)
    num_slices = 2 if total_tiles >= 2 else 1      # leading "parallel" axis (2 TCs on v7x)
    steps = _cdiv(total_tiles, num_slices)
    n_pad = num_slices * steps * tile_elems
    pad = n_pad - n

    if pad:
        # Only taken for non-tile-aligned sizes; in-kernel index mask removes
        # the padded elements from every statistic.
        x = jnp.pad(x, (0, pad))
        t = jnp.pad(t, (0, pad))

    rows = n_pad // LANE
    x2 = x.reshape(rows, LANE)
    t2 = t.reshape(rows, LANE)

    kernel = functools.partial(
        _loss_stats_kernel,
        steps_per_slice=steps,
        tile_rows=tile_rows,
        n_valid=n,
        masked=(pad != 0),
    )

    stats = pl.pallas_call(
        kernel,
        out_shape=jax.ShapeDtypeStruct((num_slices, 4, LANE), jnp.float32),
        grid_spec=pltpu.PrefetchScalarGridSpec(
            num_scalar_prefetch=0,
            grid=(num_slices, steps),
            in_specs=[
                pl.BlockSpec((tile_rows, LANE), lambda p, k: (p * steps + k, 0)),
                pl.BlockSpec((tile_rows, LANE), lambda p, k: (p * steps + k, 0)),
            ],
            out_specs=pl.BlockSpec((1, 4, LANE), lambda p, k: (p, 0, 0)),
            scratch_shapes=[pltpu.VMEM((4, tile_rows, LANE), jnp.float32)],
        ),
        compiler_params=pltpu.CompilerParams(
            dimension_semantics=("parallel", "arbitrary"),
        ),
    )(x2, t2)

    # --- tiny finalize in plain JAX (combines per-slice partials) --------
    totals = jnp.sum(stats[:, :, 0], axis=0)       # (4,)
    inter, sum_p, sum_t, bce_sum = totals[0], totals[1], totals[2], totals[3]
    cardinality = sum_p + sum_t
    dice_score = (2.0 * inter) / jnp.maximum(cardinality, DICE_EPS)
    # smp DiceLoss zeroes the loss when the target is entirely empty.
    dice_loss = (1.0 - dice_score) * (sum_t > 0.0).astype(jnp.float32)
    bce_mean = bce_sum / jnp.float32(n)
    return W_DICE * dice_loss + W_BCE * bce_mean


def _reference_loss(output, mask):
    """Pure-JAX reference reproducing smp DiceLoss + SoftBCEWithLogitsLoss."""
    x = jnp.reshape(output, (-1,)).astype(jnp.float32)
    t = jnp.reshape(mask, (-1,)).astype(jnp.float32)
    p = jax.nn.sigmoid(x)
    inter = jnp.sum(p * t)
    card = jnp.sum(p + t)
    dice_score = (2.0 * inter) / jnp.maximum(card, DICE_EPS)
    dice = (1.0 - dice_score) * (jnp.sum(t) > 0.0).astype(jnp.float32)
    soft_t = (1.0 - t) * SMOOTH_FACTOR + t * (1.0 - SMOOTH_FACTOR)
    bce = jnp.mean(jnp.maximum(x, 0.0) - x * soft_t + jnp.log1p(jnp.exp(-jnp.abs(x))))
    return W_DICE * dice + W_BCE * bce


if __name__ == "__main__":
    key = jax.random.PRNGKey(0)

    # Small shape (exercises the padded / single-tile path) and a realistic
    # segmentation shape (exercises the pad-free, two-slice path).
    for shape in [(2, 1, 16, 16), (2, 1, 512, 512)]:
        k1, k2, key = jax.random.split(key, 3)
        logits = jax.random.normal(k1, shape, dtype=jnp.float32)
        gt_mask = jax.random.bernoulli(k2, p=0.4, shape=shape).astype(jnp.float32)

        loss = custom_loss(logits, gt_mask)
        jax.block_until_ready(loss)

        ref = _reference_loss(logits, gt_mask)
        jax.block_until_ready(ref)

        assert jnp.allclose(loss, ref, rtol=1e-4, atol=1e-6), (shape, loss, ref)

    print("KERNEL_OK")
</pallas_src>

<mosaic_0001>
module attributes {stable_mosaic.version = 11 : i64} {
  func.func @_loss_stats_kernel(%arg0: i32, %arg1: i32, %arg2: memref<8x128xf32, #tpu.memory_space<vmem>>, %arg3: memref<8x128xf32, #tpu.memory_space<vmem>>, %arg4: memref<1x4x128xf32, #tpu.memory_space<vmem>>, %arg5: memref<4x8x128xf32, #tpu.memory_space<vmem>>) attributes {dimension_semantics = [#tpu.dimension_semantics<parallel>, #tpu.dimension_semantics<arbitrary>], iteration_bounds = array<i64: 1, 1>, scalar_prefetch = 0 : i64, scratch_operands = 1 : i64, tpu.core_type = #tpu.core_type<tc>, window_params = [{transform_indices = @transform_0, window_bounds = array<i64: 8, 128>}, {transform_indices = @transform_1, window_bounds = array<i64: 8, 128>}, {transform_indices = @transform_2, window_bounds = array<i64: 1, 4, 128>}]} {
    %c0_i32 = arith.constant 0 : i32
    %0 = arith.cmpi eq, %arg1, %c0_i32 : i32
    %1 = arith.extui %0 : i1 to i32
    %c0_i32_0 = arith.constant 0 : i32
    %2 = arith.cmpi ne, %1, %c0_i32_0 : i32
    scf.if %2 {
      %cst_33 = arith.constant 0.000000e+00 : f32
      %72 = vector.broadcast %cst_33 : f32 to vector<4x8x128xf32>
      %c0_34 = arith.constant 0 : index
      %c0_35 = arith.constant 0 : index
      %c0_36 = arith.constant 0 : index
      %73 = vector.load %arg5[%c0_34, %c0_35, %c0_36] : memref<4x8x128xf32, #tpu.memory_space<vmem>>, vector<4x8x128xf32>
      tpu.vector_store %arg5[%c0_34, %c0_35, %c0_36], %72 {strides = array<i32>} : memref<4x8x128xf32, #tpu.memory_space<vmem>>, vector<4x8x128xf32>,
    } else {
    }
    %c0 = arith.constant 0 : index
    %c0_1 = arith.constant 0 : index
    %3 = vector.load %arg2[%c0, %c0_1] : memref<8x128xf32, #tpu.memory_space<vmem>>, vector<8x128xf32>
    %c0_2 = arith.constant 0 : index
    %c0_3 = arith.constant 0 : index
    %4 = vector.load %arg3[%c0_2, %c0_3] : memref<8x128xf32, #tpu.memory_space<vmem>>, vector<8x128xf32>
    %5 = math.absf %3 : vector<8x128xf32>
    %cst = arith.constant 0.000000e+00 : f32
    %6 = vector.broadcast %cst : f32 to vector<8x128xf32>
    %7 = arith.subf %6, %5 : vector<8x128xf32>
    %8 = math.exp %7 : vector<8x128xf32>
    %9 = math.log1p %8 : vector<8x128xf32>
    %cst_4 = arith.constant 1.000000e+00 : f32
    %10 = vector.broadcast %cst_4 : f32 to vector<8x128xf32>
    %11 = arith.addf %10, %8 : vector<8x128xf32>
    %cst_5 = arith.constant 1.000000e+00 : f32
    %12 = vector.broadcast %cst_5 : f32 to vector<8x128xf32>
    %13 = arith.divf %12, %11 : vector<8x128xf32>
    %cst_6 = arith.constant 0.000000e+00 : f32
    %14 = vector.broadcast %cst_6 : f32 to vector<8x128xf32>
    %15 = arith.cmpf oge, %3, %14 : vector<8x128xf32>
    %16 = arith.mulf %8, %13 : vector<8x128xf32>
    %17 = arith.select %15, %13, %16 : vector<8x128xi1>, vector<8x128xf32>
    %cst_7 = arith.constant 8.000000e-01 : f32
    %18 = vector.broadcast %cst_7 : f32 to vector<8x128xf32>
    %19 = arith.mulf %4, %18 : vector<8x128xf32>
    %cst_8 = arith.constant 1.000000e-01 : f32
    %20 = vector.broadcast %cst_8 : f32 to vector<8x128xf32>
    %21 = arith.addf %19, %20 : vector<8x128xf32>
    %cst_9 = arith.constant 0.000000e+00 : f32
    %22 = vector.broadcast %cst_9 : f32 to vector<8x128xf32>
    %23 = arith.maximumf %3, %22 : vector<8x128xf32>
    %24 = arith.mulf %3, %21 : vector<8x128xf32>
    %25 = arith.subf %23, %24 : vector<8x128xf32>
    %26 = arith.addf %25, %9 : vector<8x128xf32>
    %c1_i32 = arith.constant 1 : i32
    %27 = arith.muli %arg0, %c1_i32 : i32
    %28 = arith.addi %27, %arg1 : i32
    %c1024_i32 = arith.constant 1024 : i32
    %29 = arith.muli %28, %c1024_i32 : i32
    %30 = tpu.iota {dimensions = array<i32: 0>} : vector<8x128xi32>
    %31 = tpu.iota {dimensions = array<i32: 1>} : vector<8x128xi32>
    %c128_i32 = arith.constant 128 : i32
    %32 = vector.broadcast %c128_i32 : i32 to vector<8x128xi32>
    %33 = arith.muli %30, %32 : vector<8x128xi32>
    %34 = vector.broadcast %29 : i32 to vector<8x128xi32>
    %35 = arith.addi %34, %33 : vector<8x128xi32>
    %36 = arith.addi %35, %31 : vector<8x128xi32>
    %c512_i32 = arith.constant 512 : i32
    %37 = vector.broadcast %c512_i32 : i32 to vector<8x128xi32>
    %38 = arith.cmpi slt, %36, %37 : vector<8x128xi32>
    %39 = arith.extui %38 : vector<8x128xi1> to vector<8x128xi32>
    %40 = arith.sitofp %39 : vector<8x128xi32> to vector<8x128xf32>
    %41 = arith.mulf %17, %40 : vector<8x128xf32>
    %42 = arith.mulf %4, %40 : vector<8x128xf32>
    %43 = arith.mulf %26, %40 : vector<8x128xf32>
    %c0_10 = arith.constant 0 : index
    %c0_11 = arith.constant 0 : index
    %c0_12 = arith.constant 0 : index
    %44 = vector.load %arg5[%c0_10, %c0_11, %c0_12] : memref<4x8x128xf32, #tpu.memory_space<vmem>>, vector<1x8x128xf32>
    %45 = vector.shape_cast %44 : vector<1x8x128xf32> to vector<8x128xf32>
    %46 = arith.mulf %41, %42 : vector<8x128xf32>
    %47 = arith.addf %45, %46 : vector<8x128xf32>
    %c0_13 = arith.constant 0 : index
    %c0_14 = arith.constant 0 : index
    %c0_15 = arith.constant 0 : index
    %48 = vector.load %arg5[%c0_13, %c0_14, %c0_15] : memref<4x8x128xf32, #tpu.memory_space<vmem>>, vector<1x8x128xf32>
    %49 = vector.shape_cast %48 : vector<1x8x128xf32> to vector<8x128xf32>
    %50 = vector.shape_cast %47 : vector<8x128xf32> to vector<1x8x128xf32>
    tpu.vector_store %arg5[%c0_13, %c0_14, %c0_15], %50 {strides = array<i32>} : memref<4x8x128xf32, #tpu.memory_space<vmem>>, vector<1x8x128xf32>,
    %c1 = arith.constant 1 : index
    %c0_16 = arith.constant 0 : index
    %c0_17 = arith.constant 0 : index
    %51 = vector.load %arg5[%c1, %c0_16, %c0_17] : memref<4x8x128xf32, #tpu.memory_space<vmem>>, vector<1x8x128xf32>
    %52 = vector.shape_cast %51 : vector<1x8x128xf32> to vector<8x128xf32>
    %53 = arith.addf %52, %41 : vector<8x128xf32>
    %c1_18 = arith.constant 1 : index
    %c0_19 = arith.constant 0 : index
    %c0_20 = arith.constant 0 : index
    %54 = vector.load %arg5[%c1_18, %c0_19, %c0_20] : memref<4x8x128xf32, #tpu.memory_space<vmem>>, vector<1x8x128xf32>
    %55 = vector.shape_cast %54 : vector<1x8x128xf32> to vector<8x128xf32>
    %56 = vector.shape_cast %53 : vector<8x128xf32> to vector<1x8x128xf32>
    tpu.vector_store %arg5[%c1_18, %c0_19, %c0_20], %56 {strides = array<i32>} : memref<4x8x128xf32, #tpu.memory_space<vmem>>, vector<1x8x128xf32>,
    %c2 = arith.constant 2 : index
    %c0_21 = arith.constant 0 : index
    %c0_22 = arith.constant 0 : index
    %57 = vector.load %arg5[%c2, %c0_21, %c0_22] : memref<4x8x128xf32, #tpu.memory_space<vmem>>, vector<1x8x128xf32>
    %58 = vector.shape_cast %57 : vector<1x8x128xf32> to vector<8x128xf32>
    %59 = arith.addf %58, %42 : vector<8x128xf32>
    %c2_23 = arith.constant 2 : index
    %c0_24 = arith.constant 0 : index
    %c0_25 = arith.constant 0 : index
    %60 = vector.load %arg5[%c2_23, %c0_24, %c0_25] : memref<4x8x128xf32, #tpu.memory_space<vmem>>, vector<1x8x128xf32>
    %61 = vector.shape_cast %60 : vector<1x8x128xf32> to vector<8x128xf32>
    %62 = vector.shape_cast %59 : vector<8x128xf32> to vector<1x8x128xf32>
    tpu.vector_store %arg5[%c2_23, %c0_24, %c0_25], %62 {strides = array<i32>} : memref<4x8x128xf32, #tpu.memory_space<vmem>>, vector<1x8x128xf32>,
    %c3 = arith.constant 3 : index
    %c0_26 = arith.constant 0 : index
    %c0_27 = arith.constant 0 : index
    %63 = vector.load %arg5[%c3, %c0_26, %c0_27] : memref<4x8x128xf32, #tpu.memory_space<vmem>>, vector<1x8x128xf32>
    %64 = vector.shape_cast %63 : vector<1x8x128xf32> to vector<8x128xf32>
    %65 = arith.addf %64, %43 : vector<8x128xf32>
    %c3_28 = arith.constant 3 : index
    %c0_29 = arith.constant 0 : index
    %c0_30 = arith.constant 0 : index
    %66 = vector.load %arg5[%c3_28, %c0_29, %c0_30] : memref<4x8x128xf32, #tpu.memory_space<vmem>>, vector<1x8x128xf32>
    %67 = vector.shape_cast %66 : vector<1x8x128xf32> to vector<8x128xf32>
    %68 = vector.shape_cast %65 : vector<8x128xf32> to vector<1x8x128xf32>
    tpu.vector_store %arg5[%c3_28, %c0_29, %c0_30], %68 {strides = array<i32>} : memref<4x8x128xf32, #tpu.memory_space<vmem>>, vector<1x8x128xf32>,
    %c0_i32_31 = arith.constant 0 : i32
    %69 = arith.cmpi eq, %arg1, %c0_i32_31 : i32
    %70 = arith.extui %69 : i1 to i32
    %c0_i32_32 = arith.constant 0 : i32
    %71 = arith.cmpi ne, %70, %c0_i32_32 : i32
    scf.if %71 {
      %c0_33 = arith.constant 0 : index
      %c0_34 = arith.constant 0 : index
      %c0_35 = arith.constant 0 : index
      %72 = vector.load %arg5[%c0_33, %c0_34, %c0_35] : memref<4x8x128xf32, #tpu.memory_space<vmem>>, vector<1x8x128xf32>
      %73 = vector.shape_cast %72 : vector<1x8x128xf32> to vector<8x128xf32>
      %74 = vector.shape_cast %73 : vector<8x128xf32> to vector<1x8x128xf32>
      %cst_36 = arith.constant dense<0.000000e+00> : vector<1xf32>
      %75 = vector.multi_reduction <add>, %74, %cst_36 [1, 2] : vector<1x8x128xf32> to vector<1xf32>
      %76 = vector.shape_cast %75 : vector<1xf32> to vector<1x1x1xf32>
      %77 = vector.extract %76[0, 0, 0] : f32 from vector<1x1x1xf32>
      %c1_37 = arith.constant 1 : index
      %c0_38 = arith.constant 0 : index
      %c0_39 = arith.constant 0 : index
      %78 = vector.load %arg5[%c1_37, %c0_38, %c0_39] : memref<4x8x128xf32, #tpu.memory_space<vmem>>, vector<1x8x128xf32>
      %79 = vector.shape_cast %78 : vector<1x8x128xf32> to vector<8x128xf32>
      %80 = vector.shape_cast %79 : vector<8x128xf32> to vector<1x8x128xf32>
      %cst_40 = arith.constant dense<0.000000e+00> : vector<1xf32>
      %81 = vector.multi_reduction <add>, %80, %cst_40 [1, 2] : vector<1x8x128xf32> to vector<1xf32>
      %82 = vector.shape_cast %81 : vector<1xf32> to vector<1x1x1xf32>
      %83 = vector.extract %82[0, 0, 0] : f32 from vector<1x1x1xf32>
      %c2_41 = arith.constant 2 : index
      %c0_42 = arith.constant 0 : index
      %c0_43 = arith.constant 0 : index
      %84 = vector.load %arg5[%c2_41, %c0_42, %c0_43] : memref<4x8x128xf32, #tpu.memory_space<vmem>>, vector<1x8x128xf32>
      %85 = vector.shape_cast %84 : vector<1x8x128xf32> to vector<8x128xf32>
      %86 = vector.shape_cast %85 : vector<8x128xf32> to vector<1x8x128xf32>
      %cst_44 = arith.constant dense<0.000000e+00> : vector<1xf32>
      %87 = vector.multi_reduction <add>, %86, %cst_44 [1, 2] : vector<1x8x128xf32> to vector<1xf32>
      %88 = vector.shape_cast %87 : vector<1xf32> to vector<1x1x1xf32>
      %89 = vector.extract %88[0, 0, 0] : f32 from vector<1x1x1xf32>
      %c3_45 = arith.constant 3 : index
      %c0_46 = arith.constant 0 : index
      %c0_47 = arith.constant 0 : index
      %90 = vector.load %arg5[%c3_45, %c0_46, %c0_47] : memref<4x8x128xf32, #tpu.memory_space<vmem>>, vector<1x8x128xf32>
      %91 = vector.shape_cast %90 : vector<1x8x128xf32> to vector<8x128xf32>
      %92 = vector.shape_cast %91 : vector<8x128xf32> to vector<1x8x128xf32>
      %cst_48 = arith.constant dense<0.000000e+00> : vector<1xf32>
      %93 = vector.multi_reduction <add>, %92, %cst_48 [1, 2] : vector<1x8x128xf32> to vector<1xf32>
      %94 = vector.shape_cast %93 : vector<1xf32> to vector<1x1x1xf32>
      %95 = vector.extract %94[0, 0, 0] : f32 from vector<1x1x1xf32>
      %96 = tpu.iota {dimensions = array<i32: 0>} : vector<4x128xi32>
      %c0_i32_49 = arith.constant 0 : i32
      %97 = vector.broadcast %c0_i32_49 : i32 to vector<4x128xi32>
      %98 = arith.cmpi eq, %96, %97 : vector<4x128xi32>
      %cst_50 = arith.constant 0.000000e+00 : f32
      %99 = vector.broadcast %77 : f32 to vector<4x128xf32>
      %100 = vector.broadcast %cst_50 : f32 to vector<4x128xf32>
      %101 = arith.select %98, %99, %100 : vector<4x128xi1>, vector<4x128xf32>
      %c1_i32_51 = arith.constant 1 : i32
      %102 = vector.broadcast %c1_i32_51 : i32 to vector<4x128xi32>
      %103 = arith.cmpi eq, %96, %102 : vector<4x128xi32>
      %cst_52 = arith.constant 0.000000e+00 : f32
      %104 = vector.broadcast %83 : f32 to vector<4x128xf32>
      %105 = vector.broadcast %cst_52 : f32 to vector<4x128xf32>
      %106 = arith.select %103, %104, %105 : vector<4x128xi1>, vector<4x128xf32>
      %107 = arith.addf %101, %106 : vector<4x128xf32>
      %c2_i32 = arith.constant 2 : i32
      %108 = vector.broadcast %c2_i32 : i32 to vector<4x128xi32>
      %109 = arith.cmpi eq, %96, %108 : vector<4x128xi32>
      %cst_53 = arith.constant 0.000000e+00 : f32
      %110 = vector.broadcast %89 : f32 to vector<4x128xf32>
      %111 = vector.broadcast %cst_53 : f32 to vector<4x128xf32>
      %112 = arith.select %109, %110, %111 : vector<4x128xi1>, vector<4x128xf32>
      %113 = arith.addf %107, %112 : vector<4x128xf32>
      %c3_i32 = arith.constant 3 : i32
      %114 = vector.broadcast %c3_i32 : i32 to vector<4x128xi32>
      %115 = arith.cmpi eq, %96, %114 : vector<4x128xi32>
      %cst_54 = arith.constant 0.000000e+00 : f32
      %116 = vector.broadcast %95 : f32 to vector<4x128xf32>
      %117 = vector.broadcast %cst_54 : f32 to vector<4x128xf32>
      %118 = arith.select %115, %116, %117 : vector<4x128xi1>, vector<4x128xf32>
      %119 = arith.addf %113, %118 : vector<4x128xf32>
      %c0_55 = arith.constant 0 : index
      %c0_56 = arith.constant 0 : index
      %c0_57 = arith.constant 0 : index
      %120 = vector.load %arg4[%c0_55, %c0_56, %c0_57] : memref<1x4x128xf32, #tpu.memory_space<vmem>>, vector<1x4x128xf32>
      %121 = vector.shape_cast %120 : vector<1x4x128xf32> to vector<4x128xf32>
      %122 = vector.shape_cast %119 : vector<4x128xf32> to vector<1x4x128xf32>
      tpu.vector_store %arg4[%c0_55, %c0_56, %c0_57], %122 {strides = array<i32>} : memref<1x4x128xf32, #tpu.memory_space<vmem>>, vector<1x4x128xf32>,
    } else {
    }
    return
  }
  func.func @transform_0(%arg0: i32, %arg1: i32) -> (i32, i32) {
    %c1_i32 = arith.constant 1 : i32
    %0 = arith.muli %arg0, %c1_i32 : i32
    %1 = arith.addi %0, %arg1 : i32
    %c0_i32 = arith.constant 0 : i32
    %c0_i32_0 = arith.constant 0 : i32
    return %1, %c0_i32 : i32, i32
  }
  func.func @transform_1(%arg0: i32, %arg1: i32) -> (i32, i32) {
    %c1_i32 = arith.constant 1 : i32
    %0 = arith.muli %arg0, %c1_i32 : i32
    %1 = arith.addi %0, %arg1 : i32
    %c0_i32 = arith.constant 0 : i32
    %c0_i32_0 = arith.constant 0 : i32
    return %1, %c0_i32 : i32, i32
  }
  func.func @transform_2(%arg0: i32, %arg1: i32) -> (i32, i32, i32) {
    %c0_i32 = arith.constant 0 : i32
    %c0_i32_0 = arith.constant 0 : i32
    %c0_i32_1 = arith.constant 0 : i32
    return %arg0, %c0_i32, %c0_i32_0 : i32, i32, i32
  }
}

</mosaic_0001>

<bundles_post_ra>
// kernel: tpu_custom_call.1
= control target key start
LH: loop header
LB: loop body
LE: loop exit
PB: predicated region body
PF: predicated region fallthrough
CT: control target
= control target key end

     0   :  { %7 = vsyncpa [#allocation4], 0  ;;  %s339_s0 = inlined_call_operand.hbm [shape: f32[8,128], index: 0, kind: input, shape index: {}]   ;;  %s340_s1 = inlined_call_operand.hbm [shape: f32[8,128], index: 1, kind: input, shape index: {}]   ;;  %s341_s2 = inlined_call_operand.hbm [shape: f32[1,4,128], index: 2, kind: output, shape index: {}]  }
   0x1   :  { %8 = vsyncpa [#allocation7], 0 }
   0x2   :  { %9 = vsyncpa [#allocation5], 0  ;;  %s277_s9 = smov [#allocation3]   ;;  %s278_s11 = smov [#allocation6]  }
   0x3   :  { %s19_s10 = sshll.u32 %s277_s9, 4  ;;  %s32_s12 = sshll.u32 %s278_s11, 4  ;;  %s20_s10 = int_to_ptr.vmem [resolvable:$true] %s19_s10  ;;  %s33_s12 = int_to_ptr.vmem [resolvable:$true] %s32_s12 }
   0x4   :  { %s205_s15 = scalar_lea.hbm %s339_s0, 128 }
   0x5   :  { %p206_p0 = scmp.ne.s32.totalorder %s339_s0, %s205_s15  ;;  %p209_p1 = scmp.lt.u32.totalorder %s205_s15, %s339_s0 }
   0x7   :  { %p211_p2 = pnand %p209_p1, %p206_p0 }
   0x9   :  { %214 = shalt.err (!%p211_p2)
}
   0xa   :  { %s215_s20 = scalar_lea.vmem %s20_s10, 128  ;;  %p220_p4 = scmp.lt.s32.totalorder %s20_s10, %s20_s10 }
   0xb   :  { %p216_p3 = scmp.ne.s32.totalorder %s20_s10, %s215_s20  ;;  %p221_p5 = scmp.lt.s32.totalorder %s215_s20, %s215_s20 }
   0xd   :  { %p222_p6 = por %p221_p5, %p220_p4 }
   0xf   :  { %p223_p7 = pnand %p222_p6, %p216_p3 }
  0x11   :  { %226 = shalt.err (!%p223_p7)
}
  0x12   :  { %22 = dma.hbm_to_vmem [thread:$0]  %s339_s0, 128, %s20_s10, [#allocation4]  }
  0x13   :  { %s227_s25 = scalar_lea.hbm %s340_s1, 128 }
  0x14   :  { %p228_p8 = scmp.ne.s32.totalorder %s340_s1, %s227_s25  ;;  %p231_p9 = scmp.lt.u32.totalorder %s227_s25, %s340_s1 }
  0x16   :  { %p233_p10 = pnand %p231_p9, %p228_p8 }
  0x18   :  { %236 = shalt.err (!%p233_p10)
}
  0x19   :  { %s237_s30 = scalar_lea.vmem %s33_s12, 128  ;;  %p242_p12 = scmp.lt.s32.totalorder %s33_s12, %s33_s12 }
  0x1a   :  { %p238_p11 = scmp.ne.s32.totalorder %s33_s12, %s237_s30  ;;  %p243_p13 = scmp.lt.s32.totalorder %s237_s30, %s237_s30 }
  0x1c   :  { %p244_p0 = por %p243_p13, %p242_p12 }
  0x1e   :  { %p245_p1 = pnand %p244_p0, %p238_p11 }
  0x20   :  { %248 = shalt.err (!%p245_p1)
}
  0x21   :  { %35 = dma.hbm_to_vmem [thread:$0]  %s340_s1, 128, %s33_s12, [#allocation7]  }
  0x22   :  { %271 = dma.done.wait [#allocation4], 128  }
  0x23   :  { %272 = vsyncadd [#allocation4], 4294967168 }
  0x24   :  { %273 = dma.done.wait [#allocation7], 128  }
  0x25   :  { %274 = vsyncadd [#allocation7], 4294967168  ;;  %v81_v0 = vlaneseq  ;;  %v52_v5 = vld [vmem:[#allocation3] sm:$0xff]  ;;  %v53_v7 = vld [vmem:[#allocation6] sm:$0xff]  ;;  %v279_v8 = vmov 0.0   ;;  %s280_s7 = smov [#allocation8]  }
  0x26   :  { %v54_v6 = vand.u32 2147483647, %v52_v5  ;;  %v73_v15 = vmul.f32 0.8, %v53_v7  ;;  %v75_v21 = vmax.f32 %v52_v5, 0.0  ;;  %vm70_vm1 = vcmp.ge.f32.partialorder %v52_v5, 0.0 }
  0x27   :  { %v320_v1 = vshrl.u32 %v81_v0, 7  ;;  %v84_v2 = vand.u32 127, %v81_v0  ;;  %s176_s8 = sshll.u32 %s280_s7, 4  ;;  %s177_s8 = int_to_ptr.vmem [resolvable:$true] %s176_s8 }
  0x28   :  { %v55_v11 = vsub.f32 0.0, %v54_v6  ;;  %v74_v17 = vadd.f32 0.1, %v73_v15  ;;  %s249_s9 = scalar_lea.vmem %s177_s8, 64  ;;  %p254_p3 = scmp.lt.s32.totalorder %s177_s8, %s177_s8 }
  0x29   :  { %v85_v3 = vmul.u32 128, %v320_v1  ;;  %vm154_vm3 = vcmp.eq.s32.totalorder %v320_v1, 0  ;;  %vm157_vm4 = vcmp.eq.s32.totalorder %v320_v1, 1  ;;  %vm161_vm5 = vcmp.eq.s32.totalorder %v320_v1, 2  ;;  %p250_p2 = scmp.ne.s32.totalorder %s177_s8, %s249_s9  ;;  %p255_p4 = scmp.lt.s32.totalorder %s249_s9, %s249_s9 }
  0x2a   :  { %v56_v12 = vmul.f32 1.442695, %v55_v11  ;;  %v76_v19 = vmul.f32 %v74_v17, %v52_v5  ;;  %vm165_vm6 = vcmp.eq.s32.totalorder %v320_v1, 3 }
  0x2b   :  { %v88_v4 = vadd.s32 %v85_v3, %v84_v2  ;;  %p256_p5 = por %p255_p4, %p254_p3 }
  0x2c   :  { %199 = vpow2.f32 %v56_v12  ;;  %v77_v26 = vsub.f32 %v75_v21, %v76_v19 }
  0x2d   :  { %vm89_vm0 = vcmp.lt.s32.totalorder %v88_v4, 512  ;;  %p257_p6 = pnand %p256_p5, %p250_p2 }
  0x2e   :  { %v186_v9 = vsel %vm89_vm0, 1.0, %v279_v8 }
  0x2f   :  { %v93_v10 = vmul.f32 %v186_v9, %v53_v7 }
  0x31   :  { %135 = vadd.xlane.f32.xlu1 %v93_v10 }
  0x36   :  { %v200_v13 = vpop.eup %199 }
  0x37   :  { %v58_v14 = vadd.f32 1.0, %v200_v13  ;;  %v61_v16 = vmul.f32 -0.5, %v200_v13  ;;  %v64_v20 = vand.u32 2147483647, %v200_v13 }
  0x39   :  { %201 = vrcp.f32 %v58_v14  ;;  %v62_v18 = vadd.f32 1.0, %v61_v16  ;;  %vm65_vm2 = vcmp.lt.f32.partialorder %v64_v20, 0.0004427343 }
  0x3a   :  { %203 = vlog2.f32 %v58_v14 }
  0x3b   :  { %v63_v23 = vmul.f32 %v200_v13, %v62_v18 }
  0x43   :  { %v202_v22 = vpop.eup %201 }
  0x44   :  { %v204_v24 = vpop.eup %203  ;;  %v71_v25 = vmul.f32 %v202_v22, %v200_v13 }
  0x45   :  { %v60_v27 = vmul.f32 0.6931472, %v204_v24 }
  0x46   :  { %v72_v28 = vsel %vm70_vm1, %v202_v22, %v71_v25 }
  0x47   :  { %v92_v29 = vmul.f32 %v186_v9, %v72_v28  ;;  %v66_v30 = vsel %vm65_vm2, %v63_v23, %v60_v27 }
  0x48   :  { %v78_v31 = vadd.f32 %v77_v26, %v66_v30 }
  0x49   :  { %v96_v32 = vmul.f32 %v93_v10, %v92_v29 }
  0x4a   :  { %v94_v33 = vmul.f32 %v186_v9, %v78_v31 }
  0x4b   :  { %115 = vadd.xlane.f32.xlu0 %v96_v32 }
  0x4c   :  { %145 = vadd.xlane.f32.xlu1 %v94_v33 }
  0x4f   :  { %125 = vadd.xlane.f32.xlu0 %v92_v29 }
  0xbe   :  { %v136_v34 = vpop.xlane.xlu1 %135 }
  0xbf   :  { %v137_v35 = vrot.slane %v136_v34, 4 }
  0xc1   :  { %v138_v36 = vadd.f32 %v137_v35, %v136_v34 }
  0xc3   :  { %v139_v42 = vrot.slane %v138_v36, 2 }
  0xc5   :  { %v140_v50 = vadd.f32 %v139_v42, %v138_v36 }
  0xc7   :  { %v141_v56 = vrot.slane %v140_v50, 1 }
  0xc9   :  { %v142_v60 = vadd.f32 %v141_v56, %v140_v50 }
  0xd8   :  { %v116_v37 = vpop.xlane.xlu0 %115 }
  0xd9   :  { %v117_v38 = vrot.slane %v116_v37, 4  ;;  %v146_v39 = vpop.xlane.xlu1 %145 }
  0xda   :  { %v147_v40 = vrot.slane %v146_v39, 4 }
  0xdb   :  { %v118_v41 = vadd.f32 %v117_v38, %v116_v37 }
  0xdc   :  { %v148_v43 = vadd.f32 %v147_v40, %v146_v39  ;;  %v126_v44 = vpop.xlane.xlu0 %125 }
  0xdd   :  { %v119_v45 = vrot.slane %v118_v41, 2  ;;  %v127_v46 = vrot.slane %v126_v44, 4 }
  0xde   :  { %v149_v47 = vrot.slane %v148_v43, 2 }
  0xdf   :  { %v128_v48 = vadd.f32 %v127_v46, %v126_v44  ;;  %v120_v49 = vadd.f32 %v119_v45, %v118_v41 }
  0xe0   :  { %v150_v51 = vadd.f32 %v149_v47, %v148_v43 }
  0xe1   :  { %v129_v52 = vrot.slane %v128_v48, 2  ;;  %v121_v53 = vrot.slane %v120_v49, 1 }
  0xe2   :  { %v151_v58 = vrot.slane %v150_v51, 1 }
  0xe3   :  { %v130_v54 = vadd.f32 %v129_v52, %v128_v48  ;;  %v122_v55 = vadd.f32 %v121_v53, %v120_v49 }
  0xe4   :  { %v152_v61 = vadd.f32 %v151_v58, %v150_v51 }
  0xe5   :  { %187 = vpush %v122_v55  ;;  %v131_v57 = vrot.slane %v130_v54, 1 }
  0xe7   :  { %v132_v59 = vadd.f32 %v131_v57, %v130_v54 }
  0xe9   :  { %189 = vpush %v132_v59 }
  0xea   :  { %191 = vpush %v142_v60 }
  0xeb   :  { %193 = vpush %v152_v61 }
 0x116   :  { %s188_s1 = spop %187 }
 0x117   :  { %v155_v62 = vstv %s188_s1 }
 0x118   :  { %v156_v0 = vsel %vm154_vm3, %v155_v62, 0.0 }
 0x11a   :  { %s190_s4 = spop %189 }
 0x11b   :  { %v158_v63 = vstv %s190_s4  ;;  %s192_s5 = spop %191 }
 0x11c   :  { %v159_v2 = vsel %vm157_vm4, %v158_v63, 0.0  ;;  %v162_v3 = vstv %s192_s5  ;;  %s194_s6 = spop %193 }
 0x11d   :  { %v160_v4 = vadd.f32 %v159_v2, %v156_v0  ;;  %v166_v5 = vstv %s194_s6  ;;  %v163_v6 = vsel %vm161_vm5, %v162_v3, 0.0 }
 0x11e   :  { %v167_v8 = vsel %vm165_vm6, %v166_v5, 0.0 }
 0x11f   :  { %v164_v7 = vadd.f32 %v163_v6, %v160_v4 }
 0x121   :  { %v168_v9 = vadd.f32 %v167_v8, %v164_v7 }
 0x123   :  { %169 = vst [vmem:[#allocation8] sm:$0xf] %v168_v9 }
 0x124   :  { %260 = shalt.err (!%p257_p6)
}
 0x125   :  { %s261_s12 = scalar_lea.hbm %s341_s2, 64 }
 0x126   :  { %p262_p7 = scmp.ne.s32.totalorder %s341_s2, %s261_s12  ;;  %p265_p8 = scmp.lt.u32.totalorder %s261_s12, %s341_s2 }
 0x128   :  { %p267_p9 = pnand %p265_p8, %p262_p7 }
 0x12a   :  { %270 = shalt.err (!%p267_p9)
}
 0x12b   :  { %179 = dma.vmem_to_hbm [thread:$0]  %s177_s8, 64, %s341_s2, [#allocation5]  }
 0x12c   :  { %275 = dma.done.wait [#allocation5], 64  }
 0x12d   :  { %276 = vsyncadd [#allocation5], 4294967232 }
 0x12e   :  { %183 = vsyncpa [#allocation4], 1 }
 0x12f   :  { %184 = vsyncpa [#allocation7], 1 }
 0x130   :  { %185 = vsyncpa [#allocation5], 1 }

</bundles_post_ra>
